<compile_context>
chip_gen: v6e
topology: v6e:2x2x1
jax: 0.10.0
libtpu: 0.0.40
codegen_flags: <defaults>
</compile_context>

<pallas_src>
import functools

import jax
import jax.numpy as jnp
from jax.experimental import pallas as pl
from jax.experimental.pallas import tpu as pltpu

MAX_VALUE = 512.0
LN_EPS = 1e-5
_PARAM_ROWS = 8  # rows: [w1, b1, b2, gamma, beta, pad, pad, pad] (padded to 8 sublanes)


def cve_kernel(x_ref, p_ref, w2t_ref, o_ref, *, d_valid):
    # x_ref: (tm, 1) f32   p_ref: (8, d_pad) f32   w2t_ref: (d_pad, d_pad) bf16
    # o_ref: (tm, d_pad) out_dtype
    d_pad = o_ref.shape[-1]
    inv_d = 1.0 / d_valid

    p = p_ref[...]
    w1, b1 = p[0:1, :], p[1:2, :]
    b2, gamma, beta = p[2:3, :], p[3:4, :], p[4:5, :]

    x = jnp.minimum(x_ref[...], MAX_VALUE)                       # clamp(max=max_value)
    h = jnp.maximum(x * w1 + b1, 0.0)                            # Linear(1, d) + ReLU

    # bf16 MXU operands, f32 accumulation (w2^T arrives bf16 from the wrapper).
    y = jnp.dot(h.astype(jnp.bfloat16), w2t_ref[...],
                preferred_element_type=jnp.float32) + b2         # Linear(d, d)

    # LayerNorm with centered (two-pass) variance, matching torch.nn.LayerNorm.
    # Padded lanes of y are exactly 0 (padded w2^T columns and b2 are 0), so the
    # mean over d_valid only needs the 1/d_valid scale; the variance masks pad lanes.
    mean = jnp.sum(y, axis=-1, keepdims=True) * inv_d
    yc = y - mean
    if d_valid != d_pad:  # static, only traced when d_model % 128 != 0
        lane = jax.lax.broadcasted_iota(jnp.int32, yc.shape, 1)
        yc = jnp.where(lane < d_valid, yc, 0.0)
    var = jnp.sum(yc * yc, axis=-1, keepdims=True) * inv_d
    y_hat = yc * jax.lax.rsqrt(var + LN_EPS)
    o_ref[...] = (y_hat * gamma + beta).astype(o_ref.dtype)
    # TODO(synk): nn.Dropout is identity in eval mode; training-mode stochastic dropout
    # (pltpu.prng_seed + pltpu.prng_random_bits mask) is intentionally omitted.


def _round_up(a, m):
    return (a + m - 1) // m * m


def _vmem_limit_bytes(tm, d_pad, out_itemsize):
    x_blk = tm * 4
    p_blk = _PARAM_ROWS * d_pad * 4
    w2_blk = d_pad * d_pad * 2                     # bf16 weights
    o_blk = tm * d_pad * out_itemsize
    w2_bufs = 1 if d_pad >= 1024 else 2            # Buffered(1) only when it matters
    pipeline = 2 * (x_blk + p_blk + o_blk) + w2_bufs * w2_blk
    temps = 6 * tm * d_pad * 4                     # h / y / yc / etc. f32 temporaries
    return int(min(max(2 * (pipeline + temps), 16 << 20), 60 << 20))


@functools.lru_cache(maxsize=None)
def _build_call(n_rows, d_pad, d_valid, tm, out_dtype):
    grid = pl.cdiv(n_rows, tm)
    out_itemsize = jnp.dtype(out_dtype).itemsize
    kernel = functools.partial(cve_kernel, d_valid=d_valid)

    # Single-buffer the grid-invariant w2^T block only when it is big enough for the
    # VMEM saving to matter (relevant for v7x's 64 MiB VMEM at large d_model).
    w2_kwargs = dict(pipeline_mode=pl.Buffered(1)) if d_pad >= 1024 else {}

    cost = pl.CostEstimate(
        flops=2 * n_rows * d_pad * d_pad + 10 * n_rows * d_pad,
        transcendentals=n_rows,                         # one rsqrt per row
        bytes_accessed=(4 * n_rows                      # x (f32)
                        + out_itemsize * n_rows * d_pad # output
                        + 2 * d_pad * d_pad             # w2^T (bf16)
                        + 4 * _PARAM_ROWS * d_pad),     # packed params (f32)
    )

    return pl.pallas_call(
        kernel,
        out_shape=jax.ShapeDtypeStruct((n_rows, d_pad), out_dtype),
        grid_spec=pltpu.PrefetchScalarGridSpec(
            num_scalar_prefetch=0,
            grid=(grid,),
            in_specs=[
                pl.BlockSpec((tm, 1), lambda i: (i, 0)),               # x rows (ragged edge masked)
                pl.BlockSpec((_PARAM_ROWS, d_pad), lambda i: (0, 0)),  # packed params
                pl.BlockSpec((d_pad, d_pad), lambda i: (0, 0),
                             **w2_kwargs),                             # w2^T (bf16)
            ],
            out_specs=pl.BlockSpec((tm, d_pad), lambda i: (i, 0)),
        ),
        compiler_params=pltpu.CompilerParams(
            dimension_semantics=("parallel",),          # row tiles independent (megacore)
            vmem_limit_bytes=_vmem_limit_bytes(tm, d_pad, out_itemsize),
        ),
        cost_estimate=cost,
    )


def continuous_value_encoder(x, w1, b1, w2, b2, gamma, beta, *, tm=1024,
                             out_dtype=jnp.bfloat16):
    """x: (B, S) -> (B, S, d_model). Eval-mode forward of ContinuousValueEncoder.

    out_dtype defaults to bf16 (kernel is HBM-writeback bound); pass jnp.float32 for
    bit-closer-to-torch output at ~2x the output traffic.
    """
    B, S = x.shape
    d_model = w1.shape[0]
    d_pad = _round_up(d_model, 128)        # lane-dense feature dim
    N = B * S

    # Row tile: multiple of 8, large enough to amortize the ~0.35us/step pipeline
    # overhead, but capped so the grid has >= 2 iterations (v7x has 2 TensorCores).
    tm_eff = min(tm, _round_up(pl.cdiv(N, 2), 256), _round_up(N, 8))
    tm_eff = max(8, tm_eff)

    x_rows = x.reshape(N, 1).astype(jnp.float32)   # no padding: Pallas masks ragged edge

    def prow(v):
        v = v.reshape(-1).astype(jnp.float32)
        return jnp.pad(v, (0, d_pad - d_model)) if d_pad != d_model else v

    # Pack all grid-invariant (1, d) parameter rows into one (8, d) slab (one DMA).
    params = jnp.stack(
        [prow(w1), prow(b1), prow(b2), prow(gamma), prow(beta)]
        + [jnp.zeros((d_pad,), jnp.float32)] * (_PARAM_ROWS - 5),
        axis=0,
    )

    w2t = jnp.asarray(w2, jnp.float32).T           # kernel computes h @ w2^T
    if d_pad != d_model:
        w2t = jnp.pad(w2t, ((0, d_pad - d_model), (0, d_pad - d_model)))
    w2t = w2t.astype(jnp.bfloat16)                 # bf16 MXU operand, f32 accumulation

    out = _build_call(N, d_pad, d_model, tm_eff, jnp.dtype(out_dtype))(x_rows, params, w2t)
    if d_pad != d_model:
        out = out[:, :d_model]
    return out.reshape(B, S, d_model)


def reference(x, w1, b1, w2, b2, gamma, beta):
    xx = jnp.minimum(x[..., None], MAX_VALUE)
    h = jnp.maximum(xx @ w1.T + b1, 0.0)
    y = h @ w2.T + b2
    mean = jnp.mean(y, axis=-1, keepdims=True)
    var = jnp.mean(jnp.square(y - mean), axis=-1, keepdims=True)
    return ((y - mean) * jax.lax.rsqrt(var + LN_EPS)) * gamma + beta


if __name__ == "__main__":
    d_model = 128  # lane-dense feature dim (multiple of 128)
    key = jax.random.PRNGKey(0)
    kx, k1, k2, k3, k4, kx2 = jax.random.split(key, 6)

    # deterministic "module" parameters (shapes from __init__)
    w1 = jax.random.normal(k1, (d_model, 1), jnp.float32) * 0.5        # nn.Linear(1, d)
    b1 = jax.random.normal(k2, (d_model,), jnp.float32) * 0.1
    w2 = jax.random.normal(k3, (d_model, d_model), jnp.float32) * (1.0 / jnp.sqrt(d_model))
    b2 = jax.random.normal(k4, (d_model,), jnp.float32) * 0.1
    gamma = jnp.ones((d_model,), jnp.float32)                          # nn.LayerNorm(d)
    beta = jnp.zeros((d_model,), jnp.float32)

    # bf16 output + bf16 MXU operands -> compare against f32 reference with relaxed tol.
    TOL = dict(atol=6e-2, rtol=6e-2)

    # 1) small shape from the module spec (exercises the clamp path)
    B, S = 2, 8
    x = jax.random.uniform(kx, (B, S), jnp.float32, 0.0, 1000.0)
    out = jax.block_until_ready(continuous_value_encoder(x, w1, b1, w2, b2, gamma, beta))
    ref = reference(x, w1, b1, w2, b2, gamma, beta)
    assert out.shape == (B, S, d_model)
    assert jnp.allclose(out.astype(jnp.float32), ref, **TOL), "mismatch vs reference (small)"

    # 2) larger, non-tile-divisible shape (exercises grid=2 tiling + ragged last block)
    B2, S2 = 4, 300
    x2 = jax.random.uniform(kx2, (B2, S2), jnp.float32, 0.0, 1000.0)
    out2 = jax.block_until_ready(continuous_value_encoder(x2, w1, b1, w2, b2, gamma, beta))
    ref2 = reference(x2, w1, b1, w2, b2, gamma, beta)
    assert out2.shape == (B2, S2, d_model)
    assert jnp.allclose(out2.astype(jnp.float32), ref2, **TOL), "mismatch vs reference (tiled)"

    print("KERNEL_OK")
</pallas_src>

<mosaic_0001>
module attributes {stable_mosaic.version = 11 : i64} {
  func.func @cve_kernel(%arg0: i32, %arg1: memref<16x1xf32, #tpu.memory_space<vmem>>, %arg2: memref<8x128xf32, #tpu.memory_space<vmem>>, %arg3: memref<128x128xbf16, #tpu.memory_space<vmem>>, %arg4: memref<16x128xbf16, #tpu.memory_space<vmem>>) attributes {dimension_semantics = [#tpu.dimension_semantics<parallel>], iteration_bounds = array<i64: 1>, scalar_prefetch = 0 : i64, scratch_operands = 0 : i64, tpu.core_type = #tpu.core_type<tc>, window_params = [{transform_indices = @transform_0, window_bounds = array<i64: 16, 1>}, {pipeline_mode = #tpu.pipeline_mode<synchronous>, transform_indices = @transform_1, window_bounds = array<i64: 8, 128>}, {pipeline_mode = #tpu.pipeline_mode<synchronous>, transform_indices = @transform_2, window_bounds = array<i64: 128, 128>}, {transform_indices = @transform_3, window_bounds = array<i64: 16, 128>}]} {
    %c0 = arith.constant 0 : index
    %c0_0 = arith.constant 0 : index
    %0 = vector.load %arg2[%c0, %c0_0] : memref<8x128xf32, #tpu.memory_space<vmem>>, vector<8x128xf32>
    %1 = vector.extract_strided_slice %0 {offsets = [0, 0], sizes = [1, 128], strides = [1, 1]} : vector<8x128xf32> to vector<1x128xf32>
    %2 = vector.extract_strided_slice %0 {offsets = [1, 0], sizes = [1, 128], strides = [1, 1]} : vector<8x128xf32> to vector<1x128xf32>
    %3 = vector.extract_strided_slice %0 {offsets = [2, 0], sizes = [1, 128], strides = [1, 1]} : vector<8x128xf32> to vector<1x128xf32>
    %4 = vector.extract_strided_slice %0 {offsets = [3, 0], sizes = [1, 128], strides = [1, 1]} : vector<8x128xf32> to vector<1x128xf32>
    %5 = vector.extract_strided_slice %0 {offsets = [4, 0], sizes = [1, 128], strides = [1, 1]} : vector<8x128xf32> to vector<1x128xf32>
    %c0_1 = arith.constant 0 : index
    %c0_2 = arith.constant 0 : index
    %6 = vector.load %arg1[%c0_1, %c0_2] : memref<16x1xf32, #tpu.memory_space<vmem>>, vector<16x1xf32>
    %cst = arith.constant 5.120000e+02 : f32
    %7 = vector.broadcast %cst : f32 to vector<16x1xf32>
    %8 = arith.minimumf %6, %7 : vector<16x1xf32>
    %9 = vector.broadcast %8 : vector<16x1xf32> to vector<16x128xf32>
    %10 = vector.broadcast %1 : vector<1x128xf32> to vector<16x128xf32>
    %11 = arith.mulf %9, %10 : vector<16x128xf32>
    %12 = vector.broadcast %2 : vector<1x128xf32> to vector<16x128xf32>
    %13 = arith.addf %11, %12 : vector<16x128xf32>
    %cst_3 = arith.constant 0.000000e+00 : f32
    %14 = vector.broadcast %cst_3 : f32 to vector<16x128xf32>
    %15 = arith.maximumf %13, %14 : vector<16x128xf32>
    %16 = arith.truncf %15 : vector<16x128xf32> to vector<16x128xbf16>
    %c0_4 = arith.constant 0 : index
    %c0_5 = arith.constant 0 : index
    %17 = vector.load %arg3[%c0_4, %c0_5] : memref<128x128xbf16, #tpu.memory_space<vmem>>, vector<128x128xbf16>
    %cst_6 = arith.constant dense<0.000000e+00> : vector<16x128xf32>
    %18 = tpu.matmul %16, %17, %cst_6 {dimension_numbers = #tpu.dot_dimension_numbers<[1], [0], [0], [1], [0, 0, 1, 1], [], []>} : vector<16x128xbf16>, vector<128x128xbf16>, vector<16x128xf32> -> vector<16x128xf32>
    %19 = vector.broadcast %3 : vector<1x128xf32> to vector<16x128xf32>
    %20 = arith.addf %18, %19 : vector<16x128xf32>
    %cst_7 = arith.constant dense<0.000000e+00> : vector<16xf32>
    %21 = vector.multi_reduction <add>, %20, %cst_7 [1] : vector<16x128xf32> to vector<16xf32>
    %22 = vector.shape_cast %21 : vector<16xf32> to vector<16x1xf32>
    %cst_8 = arith.constant 7.812500e-03 : f32
    %23 = vector.broadcast %cst_8 : f32 to vector<16x1xf32>
    %24 = arith.mulf %22, %23 : vector<16x1xf32>
    %25 = vector.broadcast %24 : vector<16x1xf32> to vector<16x128xf32>
    %26 = arith.subf %20, %25 : vector<16x128xf32>
    %27 = arith.mulf %26, %26 : vector<16x128xf32>
    %cst_9 = arith.constant dense<0.000000e+00> : vector<16xf32>
    %28 = vector.multi_reduction <add>, %27, %cst_9 [1] : vector<16x128xf32> to vector<16xf32>
    %29 = vector.shape_cast %28 : vector<16xf32> to vector<16x1xf32>
    %cst_10 = arith.constant 7.812500e-03 : f32
    %30 = vector.broadcast %cst_10 : f32 to vector<16x1xf32>
    %31 = arith.mulf %29, %30 : vector<16x1xf32>
    %cst_11 = arith.constant 9.99999974E-6 : f32
    %32 = vector.broadcast %cst_11 : f32 to vector<16x1xf32>
    %33 = arith.addf %31, %32 : vector<16x1xf32>
    %34 = math.rsqrt %33 : vector<16x1xf32>
    %35 = vector.broadcast %34 : vector<16x1xf32> to vector<16x128xf32>
    %36 = arith.mulf %26, %35 : vector<16x128xf32>
    %37 = vector.broadcast %4 : vector<1x128xf32> to vector<16x128xf32>
    %38 = arith.mulf %36, %37 : vector<16x128xf32>
    %39 = vector.broadcast %5 : vector<1x128xf32> to vector<16x128xf32>
    %40 = arith.addf %38, %39 : vector<16x128xf32>
    %41 = arith.truncf %40 : vector<16x128xf32> to vector<16x128xbf16>
    %c0_12 = arith.constant 0 : index
    %c0_13 = arith.constant 0 : index
    %42 = vector.load %arg4[%c0_12, %c0_13] : memref<16x128xbf16, #tpu.memory_space<vmem>>, vector<16x128xbf16>
    tpu.vector_store %arg4[%c0_12, %c0_13], %41 {strides = array<i32>} : memref<16x128xbf16, #tpu.memory_space<vmem>>, vector<16x128xbf16>,
    return
  }
  func.func @transform_0(%arg0: i32) -> (i32, i32) {
    %c0_i32 = arith.constant 0 : i32
    %c0_i32_0 = arith.constant 0 : i32
    return %arg0, %c0_i32 : i32, i32
  }
  func.func @transform_1(%arg0: i32) -> (i32, i32) {
    %c0_i32 = arith.constant 0 : i32
    %c0_i32_0 = arith.constant 0 : i32
    %c0_i32_1 = arith.constant 0 : i32
    return %c0_i32, %c0_i32_0 : i32, i32
  }
  func.func @transform_2(%arg0: i32) -> (i32, i32) {
    %c0_i32 = arith.constant 0 : i32
    %c0_i32_0 = arith.constant 0 : i32
    %c0_i32_1 = arith.constant 0 : i32
    return %c0_i32, %c0_i32_0 : i32, i32
  }
  func.func @transform_3(%arg0: i32) -> (i32, i32) {
    %c0_i32 = arith.constant 0 : i32
    %c0_i32_0 = arith.constant 0 : i32
    return %arg0, %c0_i32 : i32, i32
  }
}

</mosaic_0001>

<bundles_post_ra>
// kernel: tpu_custom_call.1
= control target key start
LH: loop header
LB: loop body
LE: loop exit
PB: predicated region body
PF: predicated region fallthrough
CT: control target
= control target key end

     0   :  { %8 = vsyncpa [#allocation3], 0  ;;  %s388_s0 = inlined_call_operand.vmem [shape: f32[16,1], index: 0, kind: input, shape index: {}]   ;;  %s389_s1 = inlined_call_operand.vmem [shape: f32[8,128], index: 1, kind: input, shape index: {}]   ;;  %s390_s2 = inlined_call_operand.hbm [shape: bf16[128,128], index: 2, kind: input, shape index: {}]   ;;  %s391_s3 = inlined_call_operand.hbm [shape: bf16[16,128], index: 3, kind: output, shape index: {}]  }
   0x1   :  { %9 = vsyncpa [#allocation4], 0  ;;  %s340_s12 = smov [#allocation2]  }
   0x2   :  { %s19_s13 = sshll.u32 %s340_s12, 4  ;;  %s20_s13 = int_to_ptr.vmem [resolvable:$true] %s19_s13 }
   0x3   :  { %s304_s14 = scalar_lea.vmem %s20_s13, 1024  ;;  %p309_p1 = scmp.lt.s32.totalorder %s20_s13, %s20_s13 }
   0x4   :  { %p305_p0 = scmp.ne.s32.totalorder %s20_s13, %s304_s14  ;;  %p310_p2 = scmp.lt.s32.totalorder %s304_s14, %s304_s14 }
   0x6   :  { %p311_p3 = por %p310_p2, %p309_p1 }
   0x8   :  { %p312_p4 = pnand %p311_p3, %p305_p0 }
   0xa   :  { %315 = shalt.err (!%p312_p4)
}
   0xb   :  { %s341_s15 = smov 64   ;;  %s342_s16 = smov 4  }
   0xc   :  { %25 = dma.hbm_to_vmem [thread:$0]  %s390_s2, 1024, %s20_s13, [#allocation3], %s341_s15, %s341_s15, %s342_s16  }
   0xd   :  { %336 = dma.done.wait [#allocation3], 1024  }
   0xe   :  { %337 = vsyncadd [#allocation3], 4294966272  ;;  %v343_v0 = vmov 0   ;;  %v344_v1 = vmov 0.0   ;;  %v31_v2 = vld [vmem:[%s388_s0] sm:$0xff]  ;;  %v32_v3 = vld [vmem:[%s388_s0 + $0x8] sm:$0xff]  ;;  %v45_v14 = vlaneseq }
   0xf   :  { %283 = vset.pattern.permute.xlu0 %v343_v0  ;;  %256 = vmatprep.subr.bf16.mxu0 %v344_v1  ;;  %v33_v4 = vmin.f32 %v31_v2, 512.0  ;;  %v284_v5 = vld [vmem:[#allocation2 + $0x38] sm:$0xff]   ;;  %v34_v6 = vmin.f32 %v32_v3, 512.0  ;;  %v285_v7 = vld [vmem:[#allocation2 + $0x30] sm:$0xff]   ;;  %v286_v8 = vld [vmem:[#allocation2 + $0x28] sm:$0xff]   ;;  %vm345_vm0 = vmmov 0  }
  0x10   :  { %257 = vmatpush3.bf16.msra.mxu0 %v284_v5  ;;  %272 = vmatprep.mubr.msk.bf16.mxu0 %vm345_vm0, %v344_v1  ;;  %v287_v9 = vld [vmem:[#allocation2 + $0x20] sm:$0xff]   ;;  %v288_v10 = vld [vmem:[#allocation2 + $0x18] sm:$0xff]   ;;  %v289_v11 = vld [vmem:[#allocation2 + $0x10] sm:$0xff]   ;;  %v46_v15 = vshrl.u32 %v45_v14, 7 }
  0x11   :  { %37 = vperm.xlu0 %283, %v33_v4   ;;  %258 = vmatprep.subr.bf16.mxu0 %v344_v1  ;;  %v290_v12 = vld [vmem:[#allocation2 + $0x8] sm:$0xff]   ;;  %v291_v13 = vld [vmem:[#allocation2] sm:$0xff]  }
  0x12   :  { %v47_v16 = vsub.s32 0, %v46_v15  ;;  %v30_v17 = vld [vmem:[%s389_s1] sm:$0xff]  ;;  %v53_v18 = vsub.s32 1, %v46_v15  ;;  %v78_v30 = vsub.s32 2, %v46_v15  ;;  %v193_v52 = vsub.s32 3, %v46_v15  ;;  %s346_s1 = smov [#allocation5]  }
  0x13   :  { %v199_v56 = vsub.s32 4, %v46_v15  ;;  %s218_s23 = sshll.u32 %s346_s1, 4  ;;  %s219_s23 = int_to_ptr.vmem [resolvable:$true] %s218_s23 }
  0x14   :  { %259 = vmatpush3.bf16.msra.mxu0 %v285_v7  ;;  %v48_v19 = vrot.slane %v30_v17, %v47_v16  ;;  %v54_v22 = vrot.slane %v30_v17, %v53_v18  ;;  %v79_v31 = vrot.slane %v30_v17, %v78_v30  ;;  %v194_v55 = vrot.slane %v30_v17, %v193_v52  ;;  %s316_s24 = scalar_lea.vmem %s219_s23, 128  ;;  %p321_p6 = scmp.lt.s32.totalorder %s219_s23, %s219_s23 }
  0x15   :  { %42 = vperm.xlu0 %283, %v34_v6   ;;  %260 = vmatprep.subr.bf16.mxu0 %v344_v1  ;;  %v200_v60 = vrot.slane %v30_v17, %v199_v56  ;;  %p317_p5 = scmp.ne.s32.totalorder %s219_s23, %s316_s24  ;;  %p322_p7 = scmp.lt.s32.totalorder %s316_s24, %s316_s24 }
  0x17   :  { %p323_p8 = por %p322_p7, %p321_p6 }
  0x18   :  { %261 = vmatpush3.bf16.msra.mxu0 %v286_v8 }
  0x19   :  { %262 = vmatprep.subr.bf16.mxu0 %v344_v1  ;;  %p324_p9 = pnand %p323_p8, %p317_p5 }
  0x1c   :  { %263 = vmatpush3.bf16.msra.mxu0 %v287_v9 }
  0x1d   :  { %264 = vmatprep.subr.bf16.mxu0 %v344_v1 }
  0x20   :  { %265 = vmatpush3.bf16.msra.mxu0 %v288_v10 }
  0x21   :  { %266 = vmatprep.subr.bf16.mxu0 %v344_v1 }
  0x24   :  { %267 = vmatpush3.bf16.msra.mxu0 %v289_v11 }
  0x25   :  { %268 = vmatprep.subr.bf16.mxu0 %v344_v1 }
  0x28   :  { %269 = vmatpush3.bf16.msra.mxu0 %v290_v12 }
  0x29   :  { %270 = vmatprep.subr.bf16.mxu0 %v344_v1 }
  0x2c   :  { %271 = vmatpush3.bf16.msra.mxu0 %v291_v13 }
  0x8c   :  { %v38_v20 = vpop.permute.xlu0 %37 }
  0x8d   :  { %v49_v21 = vmul.f32 %v48_v19, %v38_v20 }
  0x8f   :  { %v55_v24 = vadd.f32 %v54_v22, %v49_v21 }
  0x90   :  { %v43_v23 = vpop.permute.xlu0 %42 }
  0x91   :  { %v50_v25 = vmul.f32 %v48_v19, %v43_v23  ;;  %v57_v27 = vmax.f32 %v55_v24, 0.0 }
  0x93   :  { %v56_v26 = vadd.f32 %v54_v22, %v50_v25 }
  0x95   :  { %v58_v28 = vmax.f32 %v56_v26, 0.0 }
  0x97   :  { %v59_v29 = vpack.c.bf16 %v58_v28, %v57_v27 }
  0x99   :  { %273 = vmatmul.mubr.bf16.vlgmr.msra.gmra.mxu0 %v59_v29 }
 0x159   :  { %v162_v32 = vpop.f32.mrf.mxu0 }
 0x15a   :  { %v163_v33 = vadd.f32 %v162_v32, %v79_v31 }
 0x15b   :  { %v274_v34 = vpop.f32.mrf.mxu0 }
 0x15c   :  { %169 = vadd.xlane.f32.xlu1 %v163_v33 }
 0x15d   :  { %v165_v35 = vpop.f32.mrf.mxu0 }
 0x15e   :  { %v166_v36 = vadd.f32 %v165_v35, %v79_v31 }
 0x15f   :  { %v275_v37 = vpop.f32.mrf.mxu0 }
 0x160   :  { %171 = vadd.xlane.f32.xlu1 %v166_v36 }
 0x1e5   :  { %v170_v38 = vpop.xlane.xlu1 %169 }
 0x1e6   :  { %v173_v39 = vmul.f32 0.0078125, %v170_v38 }
 0x1e8   :  { %v175_v40 = vsub.f32 %v163_v33, %v173_v39 }
 0x1e9   :  { %v172_v41 = vpop.xlane.xlu1 %171 }
 0x1ea   :  { %v174_v42 = vmul.f32 0.0078125, %v172_v41  ;;  %v177_v43 = vmul.f32 %v175_v40, %v175_v40 }
 0x1ec   :  { %v176_v44 = vsub.f32 %v166_v36, %v174_v42  ;;  %179 = vadd.xlane.f32.xlu0 %v177_v43 }
 0x1ee   :  { %v178_v45 = vmul.f32 %v176_v44, %v176_v44 }
 0x1f0   :  { %181 = vadd.xlane.f32.xlu1 %v178_v45 }
 0x275   :  { %v180_v46 = vpop.xlane.xlu0 %179 }
 0x276   :  { %v183_v47 = vmul.f32 0.0078125, %v180_v46 }
 0x278   :  { %v185_v48 = vadd.f32 1e-05, %v183_v47 }
 0x279   :  { %v182_v49 = vpop.xlane.xlu1 %181 }
 0x27a   :  { %292 = vrsqrt.f32 %v185_v48  ;;  %v184_v50 = vmul.f32 0.0078125, %v182_v49 }
 0x27c   :  { %v186_v51 = vadd.f32 1e-05, %v184_v50 }
 0x27e   :  { %294 = vrsqrt.f32 %v186_v51 }
 0x287   :  { %v293_v53 = vpop.eup %292 }
 0x288   :  { %v189_v54 = vmul.f32 %v293_v53, %v175_v40 }
 0x28a   :  { %v195_v59 = vmul.f32 %v194_v55, %v189_v54 }
 0x28b   :  { %v295_v57 = vpop.eup %294 }
 0x28c   :  { %v190_v58 = vmul.f32 %v295_v57, %v176_v44  ;;  %v201_v62 = vadd.f32 %v200_v60, %v195_v59 }
 0x28e   :  { %v196_v61 = vmul.f32 %v194_v55, %v190_v58 }
 0x290   :  { %v202_v63 = vadd.f32 %v200_v60, %v196_v61 }
 0x292   :  { %v245_v0 = vpack.c.bf16 %v202_v63, %v201_v62 }
 0x294   :  { %246 = vst [vmem:[#allocation5] sm:$0xff] %v245_v0  }
 0x295   :  { %327 = shalt.err (!%p324_p9)
}
 0x296   :  { %224 = dma.vmem_to_hbm [thread:$0]  %s219_s23, 128, %s391_s3, [#allocation4], %s341_s15, %s341_s15, %s342_s16  }
 0x297   :  { %338 = dma.done.wait [#allocation4], 128  }
 0x298   :  { %339 = vsyncadd [#allocation4], 4294967168 }
 0x299   :  { %228 = vsyncpa [#allocation3], 1 }
 0x29a   :  { %229 = vsyncpa [#allocation4], 1 }

</bundles_post_ra>
